<compile_context>
chip_gen: v5e
topology: v5e:2x2
jax: 0.10.0
libtpu: 0.0.40
codegen_flags: <defaults>
</compile_context>

<pallas_src>
import math
import jax
import jax.numpy as jnp
from jax import lax
from jax.experimental import pallas as pl
from jax.experimental.pallas import tpu as pltpu


# ----------------------------------------------------------------------------
# Tiled linear kernel: y = x @ w_t + b   (w_t already (d_in, d_out))
# ----------------------------------------------------------------------------
def _linear_kernel(x_ref, w_ref, b_ref, o_ref, acc_ref):
    @pl.when(pl.program_id(2) == 0)
    def _():
        acc_ref[...] = jnp.zeros_like(acc_ref)

    acc_ref[...] += jnp.dot(x_ref[...], w_ref[...],
                            preferred_element_type=jnp.float32)

    @pl.when(pl.program_id(2) == pl.num_programs(2) - 1)
    def _():
        o_ref[...] = (acc_ref[...] + b_ref[...]).astype(o_ref.dtype)


def _pick_tile(dim, prefs):
    """Largest preferred tile that evenly divides `dim`, else the full dim."""
    for p in prefs:
        if dim % p == 0:
            return p
    return dim


def pallas_linear(x2d, w_t, b):
    """y = x2d @ w_t + b.   x2d: (M, K), w_t: (K, N) (pre-transposed), b: (N,)."""
    M, K = x2d.shape
    N = w_t.shape[1]
    b2 = b.reshape(1, N)

    tm = _pick_tile(M, (512, 256, 128))
    tn = _pick_tile(N, (256, 128))
    tk = _pick_tile(K, (512, 256, 128))
    grid = (M // tm, N // tn, K // tk)

    return pl.pallas_call(
        _linear_kernel,
        out_shape=jax.ShapeDtypeStruct((M, N), x2d.dtype),
        grid=grid,
        in_specs=[
            pl.BlockSpec((tm, tk), lambda i, j, k: (i, k)),
            pl.BlockSpec((tk, tn), lambda i, j, k: (k, j)),
            pl.BlockSpec((1, tn), lambda i, j, k: (0, j)),
        ],
        out_specs=pl.BlockSpec((tm, tn), lambda i, j, k: (i, j)),
        scratch_shapes=[pltpu.VMEM((tm, tn), jnp.float32)],
        compiler_params=pltpu.CompilerParams(
            dimension_semantics=("parallel", "parallel", "arbitrary")),
    )(x2d, w_t, b2)


# ----------------------------------------------------------------------------
# Attention kernel: one grid step per batch element, all heads resident.
# Blocks: q (Sq, D), k/v (Sk, D), bias (Sq, Sk), out (Sq, D), p (h, Sq, Sk)
# ----------------------------------------------------------------------------
def _make_attn_kernel(h, d_k, use_bias, return_attn):
    def kernel(*refs):
        q_ref, k_ref, v_ref = refs[0], refs[1], refs[2]
        idx = 3
        bias_ref = None
        if use_bias:
            bias_ref = refs[idx]
            idx += 1
        o_ref = refs[idx]
        idx += 1
        p_ref = refs[idx] if return_attn else None

        bias = bias_ref[...] if use_bias else None   # loaded once per batch

        for i in range(h):                            # static unroll over heads
            sl = pl.ds(i * d_k, d_k)
            q = q_ref[:, sl]
            kh = k_ref[:, sl]
            vh = v_ref[:, sl]
            # scores = q @ k^T, contracting last dims directly (no transpose).
            # NOTE: no 1/sqrt(d_k) scaling -- matches the reference attention().
            scores = lax.dot_general(
                q, kh, (((1,), (1,)), ((), ())),
                preferred_element_type=jnp.float32)
            if use_bias:
                scores = scores + bias
            smax = jnp.max(scores, axis=-1, keepdims=True)
            e = jnp.exp(scores - smax)
            denom = jnp.sum(e, axis=-1, keepdims=True)
            p = e * pl.reciprocal(denom, approx=True)
            if return_attn:
                p_ref[i] = p.astype(p_ref.dtype)
            out_h = jnp.dot(p.astype(vh.dtype), vh,
                            preferred_element_type=jnp.float32)
            o_ref[:, sl] = out_h.astype(o_ref.dtype)
    return kernel


def pallas_attention(q, k, v, bias, *, h, d_k, return_attn=False):
    """q: (B, Sq, D); k, v: (B, Sk, D); bias: (B, Sq, Sk) additive or None."""
    B, Sq, D = q.shape
    Sk = k.shape[1]
    use_bias = bias is not None

    in_specs = [
        pl.BlockSpec((None, Sq, D), lambda b: (b, 0, 0)),
        pl.BlockSpec((None, Sk, D), lambda b: (b, 0, 0)),
        pl.BlockSpec((None, Sk, D), lambda b: (b, 0, 0)),
    ]
    inputs = [q, k, v]
    if use_bias:
        in_specs.append(pl.BlockSpec((None, Sq, Sk), lambda b: (b, 0, 0)))
        inputs.append(bias)

    out_shapes = [jax.ShapeDtypeStruct((B, Sq, D), q.dtype)]
    out_specs = [pl.BlockSpec((None, Sq, D), lambda b: (b, 0, 0))]
    if return_attn:
        out_shapes.append(jax.ShapeDtypeStruct((B, h, Sq, Sk), jnp.float32))
        out_specs.append(pl.BlockSpec((None, h, Sq, Sk), lambda b: (b, 0, 0, 0)))

    outs = pl.pallas_call(
        _make_attn_kernel(h, d_k, use_bias, return_attn),
        out_shape=tuple(out_shapes),
        grid=(B,),
        in_specs=in_specs,
        out_specs=tuple(out_specs),
        compiler_params=pltpu.CompilerParams(
            dimension_semantics=("parallel",)),
    )(*inputs)

    if return_attn:
        return outs[0], outs[1]
    return outs[0], None


# ----------------------------------------------------------------------------
# Module wrapper
# ----------------------------------------------------------------------------
class MultiHeadedAttentionPallas:
    def __init__(self, h, d_model, key, dropout=0.1):
        assert d_model % h == 0
        self.h = h
        self.d_k = d_model // h
        self.d_model = d_model
        self.attn = None

        bound = 1.0 / math.sqrt(d_model)
        keys = jax.random.split(key, 10)

        def mk(kw, kb):
            w = jax.random.uniform(kw, (d_model, d_model), jnp.float32, -bound, bound)
            b = jax.random.uniform(kb, (d_model,), jnp.float32, -bound, bound)
            return w, b

        # Raw parameters in PyTorch layout (out, in) -- used by the reference.
        self.params_q = mk(keys[0], keys[1])                       # linear_queries
        self.params = [mk(keys[2 + 2 * i], keys[3 + 2 * i]) for i in range(4)]

        # Kernel-side parameters: pre-transposed to (d_in, d_out) once, and
        # linear_queries + linears[0] fused into a single projection:
        #   x @ Wq^T @ W0^T + (bq @ W0^T + b0)
        wq, bq = self.params_q
        w0, b0 = self.params[0]
        self.wq_t = wq.T @ w0.T
        self.bq = bq @ w0.T + b0
        self.wk_t = self.params[1][0].T
        self.bk = self.params[1][1]
        self.wv_t = self.params[2][0].T
        self.bv = self.params[2][1]
        self.wo_t = self.params[3][0].T
        self.bo = self.params[3][1]
        # TODO(synk): nn.Dropout(p=dropout) is identity (inference mode).

    def __call__(self, query, key, value, mask=None, return_attn=False):
        B, Sq, D = query.shape
        Sk = key.shape[1]

        q = pallas_linear(query.reshape(B * Sq, D), self.wq_t, self.bq).reshape(B, Sq, D)
        k = pallas_linear(key.reshape(B * Sk, D), self.wk_t, self.bk).reshape(B, Sk, D)
        v = pallas_linear(value.reshape(B * Sk, D), self.wv_t, self.bv).reshape(B, Sk, D)

        if mask is None:
            bias = None
        else:
            m = jnp.broadcast_to(jnp.asarray(mask).reshape(B, -1, Sk), (B, Sq, Sk))
            # Additive bias: 0 where attended, -1e30 where masked (NaN-free
            # stand-in for the reference's float('-inf') masked_fill).
            bias = jnp.where(m == 0, jnp.float32(-1e30), jnp.float32(0.0))

        x, p_attn = pallas_attention(q, k, v, bias, h=self.h, d_k=self.d_k,
                                     return_attn=return_attn)
        self.attn = p_attn
        # x is already (B, Sq, d_model): heads were merged inside the kernel.
        return pallas_linear(x.reshape(B * Sq, D), self.wo_t, self.bo).reshape(B, Sq, D)


# ----------------------------------------------------------------------------
# Pure-JAX reference (mirrors the PyTorch module exactly)
# ----------------------------------------------------------------------------
def reference_forward(mha, query, key, value, mask=None):
    def lin(p, x):
        w, b = p
        return x @ w.T + b

    B = query.shape[0]
    q0 = lin(mha.params_q, query)

    def split(x):
        return x.reshape(B, -1, mha.h, mha.d_k).transpose(0, 2, 1, 3)

    q = split(lin(mha.params[0], q0))
    k = split(lin(mha.params[1], key))
    v = split(lin(mha.params[2], value))

    scores = jnp.einsum("bhqd,bhkd->bhqk", q, k)   # no 1/sqrt(d_k) scale
    if mask is not None:
        m = jnp.asarray(mask).reshape(B, 1, -1, jnp.asarray(mask).shape[-1])
        scores = jnp.where(m == 0, -jnp.inf, scores)
    p = jax.nn.softmax(scores, axis=-1)
    x = jnp.einsum("bhqk,bhkd->bhqd", p, v)
    x = x.transpose(0, 2, 1, 3).reshape(B, -1, mha.h * mha.d_k)
    return lin(mha.params[3], x), p


if __name__ == "__main__":
    B, S, d_model, h = 2, 8, 32, 4
    root = jax.random.PRNGKey(0)
    kq, kk, kv, kp = jax.random.split(root, 4)

    query = jax.random.normal(kq, (B, S, d_model), jnp.float32)
    key_in = jax.random.normal(kk, (B, S, d_model), jnp.float32)
    value = jax.random.normal(kv, (B, S, d_model), jnp.float32)

    mha = MultiHeadedAttentionPallas(h, d_model, kp)

    # --- unmasked forward (p_attn elided for bandwidth) ---
    out = mha(query, key_in, value, mask=None)
    out = jax.block_until_ready(out)
    ref_out, _ = reference_forward(mha, query, key_in, value, mask=None)
    assert out.shape == (B, S, d_model)
    assert jnp.allclose(out, ref_out, atol=2e-3, rtol=2e-3), "unmasked mismatch"

    # --- causal-masked forward with attention probabilities returned ---
    causal = jnp.broadcast_to(jnp.tril(jnp.ones((S, S), jnp.float32)), (B, S, S))
    out_m = mha(query, key_in, value, mask=causal, return_attn=True)
    out_m = jax.block_until_ready(out_m)
    ref_out_m, ref_p = reference_forward(mha, query, key_in, value, mask=causal)
    assert out_m.shape == (B, S, d_model)
    assert mha.attn is not None and mha.attn.shape == (B, h, S, S)
    assert jnp.allclose(out_m, ref_out_m, atol=2e-3, rtol=2e-3), "masked mismatch"
    assert jnp.allclose(mha.attn, ref_p, atol=2e-3, rtol=2e-3), "p_attn mismatch"

    print("KERNEL_OK")
</pallas_src>

<mosaic_0001>
module attributes {stable_mosaic.version = 11 : i64} {
  func.func @_linear_kernel(%arg0: i32, %arg1: i32, %arg2: i32, %arg3: memref<16x32xf32, #tpu.memory_space<vmem>>, %arg4: memref<32x32xf32, #tpu.memory_space<vmem>>, %arg5: memref<1x32xf32, #tpu.memory_space<vmem>>, %arg6: memref<16x32xf32, #tpu.memory_space<vmem>>, %arg7: memref<16x32xf32, #tpu.memory_space<vmem>>) attributes {dimension_semantics = [#tpu.dimension_semantics<parallel>, #tpu.dimension_semantics<parallel>, #tpu.dimension_semantics<arbitrary>], iteration_bounds = array<i64: 1, 1, 1>, scalar_prefetch = 0 : i64, scratch_operands = 1 : i64, tpu.core_type = #tpu.core_type<tc>, window_params = [{transform_indices = @transform_0, window_bounds = array<i64: 16, 32>}, {transform_indices = @transform_1, window_bounds = array<i64: 32, 32>}, {transform_indices = @transform_2, window_bounds = array<i64: 1, 32>}, {transform_indices = @transform_3, window_bounds = array<i64: 16, 32>}]} {
    %c0_i32 = arith.constant 0 : i32
    %0 = arith.cmpi eq, %arg2, %c0_i32 : i32
    %1 = arith.extui %0 : i1 to i32
    %c0_i32_0 = arith.constant 0 : i32
    %2 = arith.cmpi ne, %1, %c0_i32_0 : i32
    scf.if %2 {
      %cst_10 = arith.constant 0.000000e+00 : f32
      %12 = vector.broadcast %cst_10 : f32 to vector<16x32xf32>
      %c0_11 = arith.constant 0 : index
      %c0_12 = arith.constant 0 : index
      %13 = vector.load %arg7[%c0_11, %c0_12] : memref<16x32xf32, #tpu.memory_space<vmem>>, vector<16x32xf32>
      tpu.vector_store %arg7[%c0_11, %c0_12], %12 {strides = array<i32>} : memref<16x32xf32, #tpu.memory_space<vmem>>, vector<16x32xf32>,
    } else {
    }
    %c0 = arith.constant 0 : index
    %c0_1 = arith.constant 0 : index
    %3 = vector.load %arg7[%c0, %c0_1] : memref<16x32xf32, #tpu.memory_space<vmem>>, vector<16x32xf32>
    %c0_2 = arith.constant 0 : index
    %c0_3 = arith.constant 0 : index
    %4 = vector.load %arg3[%c0_2, %c0_3] : memref<16x32xf32, #tpu.memory_space<vmem>>, vector<16x32xf32>
    %c0_4 = arith.constant 0 : index
    %c0_5 = arith.constant 0 : index
    %5 = vector.load %arg4[%c0_4, %c0_5] : memref<32x32xf32, #tpu.memory_space<vmem>>, vector<32x32xf32>
    %cst = arith.constant dense<0.000000e+00> : vector<16x32xf32>
    %6 = tpu.matmul %4, %5, %cst {dimension_numbers = #tpu.dot_dimension_numbers<[1], [0], [0], [1], [0, 0, 1, 1], [], []>} : vector<16x32xf32>, vector<32x32xf32>, vector<16x32xf32> -> vector<16x32xf32>
    %7 = arith.addf %3, %6 : vector<16x32xf32>
    %c0_6 = arith.constant 0 : index
    %c0_7 = arith.constant 0 : index
    %8 = vector.load %arg7[%c0_6, %c0_7] : memref<16x32xf32, #tpu.memory_space<vmem>>, vector<16x32xf32>
    tpu.vector_store %arg7[%c0_6, %c0_7], %7 {strides = array<i32>} : memref<16x32xf32, #tpu.memory_space<vmem>>, vector<16x32xf32>,
    %c0_i32_8 = arith.constant 0 : i32
    %9 = arith.cmpi eq, %arg2, %c0_i32_8 : i32
    %10 = arith.extui %9 : i1 to i32
    %c0_i32_9 = arith.constant 0 : i32
    %11 = arith.cmpi ne, %10, %c0_i32_9 : i32
    scf.if %11 {
      %c0_10 = arith.constant 0 : index
      %c0_11 = arith.constant 0 : index
      %12 = vector.load %arg7[%c0_10, %c0_11] : memref<16x32xf32, #tpu.memory_space<vmem>>, vector<16x32xf32>
      %c0_12 = arith.constant 0 : index
      %c0_13 = arith.constant 0 : index
      %13 = vector.load %arg5[%c0_12, %c0_13] : memref<1x32xf32, #tpu.memory_space<vmem>>, vector<1x32xf32>
      %14 = vector.broadcast %13 : vector<1x32xf32> to vector<16x32xf32>
      %15 = arith.addf %12, %14 : vector<16x32xf32>
      %c0_14 = arith.constant 0 : index
      %c0_15 = arith.constant 0 : index
      %16 = vector.load %arg6[%c0_14, %c0_15] : memref<16x32xf32, #tpu.memory_space<vmem>>, vector<16x32xf32>
      tpu.vector_store %arg6[%c0_14, %c0_15], %15 {strides = array<i32>} : memref<16x32xf32, #tpu.memory_space<vmem>>, vector<16x32xf32>,
    } else {
    }
    return
  }
  func.func @transform_0(%arg0: i32, %arg1: i32, %arg2: i32) -> (i32, i32) {
    %c0_i32 = arith.constant 0 : i32
    return %arg0, %arg2 : i32, i32
  }
  func.func @transform_1(%arg0: i32, %arg1: i32, %arg2: i32) -> (i32, i32) {
    %c0_i32 = arith.constant 0 : i32
    return %arg2, %arg1 : i32, i32
  }
  func.func @transform_2(%arg0: i32, %arg1: i32, %arg2: i32) -> (i32, i32) {
    %c0_i32 = arith.constant 0 : i32
    %c0_i32_0 = arith.constant 0 : i32
    return %c0_i32, %arg1 : i32, i32
  }
  func.func @transform_3(%arg0: i32, %arg1: i32, %arg2: i32) -> (i32, i32) {
    %c0_i32 = arith.constant 0 : i32
    return %arg0, %arg1 : i32, i32
  }
}

</mosaic_0001>

<bundles_post_ra>
// kernel: tpu_custom_call.1
= control target key start
LH: loop header
LB: loop body
LE: loop exit
PB: predicated region body
PF: predicated region fallthrough
CT: control target
= control target key end

     0   :  { %8 = vsyncpa [#allocation4], 0  ;;  %s275_s0 = inlined_call_operand.hbm [shape: f32[16,32], index: 0, kind: input, shape index: {}]   ;;  %s276_s1 = inlined_call_operand.hbm [shape: f32[32,32], index: 1, kind: input, shape index: {}]   ;;  %s277_s2 = inlined_call_operand.vmem [shape: f32[1,32], index: 2, kind: input, shape index: {}]   ;;  %s278_s3 = inlined_call_operand.hbm [shape: f32[16,32], index: 3, kind: output, shape index: {}]  }
   0x1   :  { %9 = vsyncpa [#allocation7], 0 }
   0x2   :  { %10 = vsyncpa [#allocation5], 0  ;;  %s15_s14 = sshll.u32 %s275_s0, 4  ;;  %s220_s15 = smov [#allocation3]   ;;  %s16_s14 = int_to_ptr.hbm [resolvable:$true] %s15_s14 }
   0x3   :  { %s17_s16 = sshll.u32 %s220_s15, 4  ;;  %s28_s19 = sshll.u32 %s276_s1, 4  ;;  %s18_s16 = int_to_ptr.vmem [resolvable:$true] %s17_s16  ;;  %s29_s19 = int_to_ptr.hbm [resolvable:$true] %s28_s19 }
   0x4   :  { %s221_s20 = smov 128   ;;  %s222_s21 = smov 8  }
   0x5   :  { %23 = dma.hbm_to_vmem [thread:$0]  %s16_s14, 256, %s18_s16, [#allocation4], %s221_s20, %s221_s20, %s222_s21  }
   0x6   :  { %s223_s22 = smov [#allocation6]  }
   0x7   :  { %s30_s23 = sshll.u32 %s223_s22, 4  ;;  %s31_s23 = int_to_ptr.vmem [resolvable:$true] %s30_s23 }
   0x8   :  { %36 = dma.hbm_to_vmem [thread:$0]  %s29_s19, 512, %s31_s23, [#allocation7], %s221_s20, %s221_s20, %s222_s21  }
   0x9   :  { %214 = dma.done.wait [#allocation4], 256  }
   0xa   :  { %215 = vsyncadd [#allocation4], 4294967040 }
   0xb   :  { %216 = dma.done.wait [#allocation7], 512  }
   0xc   :  { %217 = vsyncadd [#allocation7], 4294966784  ;;  %vm51_vm0 = vcmask 261120   ;;  %v224_v0 = vmov 0.0   ;;  %v61_v1 = vld [vmem:[#allocation6 + $0x18] sm:$0xff]  ;;  %v60_v2 = vld [vmem:[#allocation6 + $0x10] sm:$0xff] }
   0xd   :  { %52 = vst.msk [vmem:[#allocation2] sm:$0xff] %vm51_vm0, %v224_v0  ;;  %81 = vmatpush.msra.mxu0 %v61_v1  ;;  %131 = vmatpush.msra.mxu1 %v61_v1  ;;  %v59_v3 = vld [vmem:[#allocation6 + $0x8] sm:$0xff]  ;;  %v58_v4 = vld [vmem:[#allocation6] sm:$0xff]  ;;  %v56_v5 = vld [vmem:[#allocation3] sm:$0xff]  ;;  %s225_s24 = smov [#allocation8]   ;;  %s115_s28 = sshll.u32 %s278_s3, 4  ;;  %s116_s28 = int_to_ptr.hbm [resolvable:$true] %s115_s28 }
   0xe   :  { %53 = vst.msk [vmem:[#allocation2 + $0x8] sm:$0xff] %vm51_vm0, %v224_v0  ;;  %v57_v6 = vld [vmem:[#allocation3 + $0x8] sm:$0xff]  ;;  %v141_v13 = vld [vmem:[%s277_s2] ss:$0 sm:$0xff]  ;;  %s113_s25 = sshll.u32 %s225_s24, 4  ;;  %s114_s25 = int_to_ptr.vmem [resolvable:$true] %s113_s25 }
   0xf   :  { %82 = vmatpush.msra.mxu0 %v60_v2  ;;  %132 = vmatpush.msra.mxu1 %v60_v2 }
  0x11   :  { %83 = vmatpush.msra.mxu0 %v59_v3  ;;  %133 = vmatpush.msra.mxu1 %v59_v3 }
  0x13   :  { %84 = vmatpush.msra.mxu0 %v58_v4  ;;  %134 = vmatpush.msra.mxu1 %v58_v4 }
  0x14   :  { %129 = vmatmul.msk.f32.vlgmr.msra.gmra.mxu0 %vm51_vm0, %v56_v5  ;;  %130 = vmatmul.msk.f32.vlgmr.msra.gmra.mxu1 %vm51_vm0, %v57_v6  ;;  %v54_v7 = vld [vmem:[#allocation2] sm:$0xff] }
  0x15   :  { %v55_v8 = vld [vmem:[#allocation2 + $0x8] sm:$0xff] }
  0x91   :  { %v86_v9 = vpop.f32.mrf.mxu0  ;;  %v89_v10 = vpop.f32.mrf.mxu1 }
  0x92   :  { %v92_v11 = vadd.f32 %v86_v9, %v54_v7  ;;  %v93_v12 = vadd.f32 %v89_v10, %v55_v8 }
  0x94   :  { %94 = vst.msk [vmem:[#allocation2] sm:$0xff] %vm51_vm0, %v92_v11 }
  0x95   :  { %95 = vst.msk [vmem:[#allocation2 + $0x8] sm:$0xff] %vm51_vm0, %v93_v12 }
  0x9b   :  { %v99_v14 = vld [vmem:[#allocation2] sm:$0xff] }
  0x9c   :  { %v100_v15 = vld [vmem:[#allocation2 + $0x8] sm:$0xff]  ;;  %v105_v16 = vadd.f32 %v141_v13, %v99_v14 }
  0x9d   :  { %v106_v17 = vadd.f32 %v141_v13, %v100_v15 }
  0x9e   :  { %107 = vst.msk [vmem:[#allocation8] sm:$0xff] %vm51_vm0, %v105_v16 }
  0x9f   :  { %108 = vst.msk [vmem:[#allocation8 + $0x8] sm:$0xff] %vm51_vm0, %v106_v17 }
  0xa0   :  { %121 = dma.vmem_to_hbm [thread:$0]  %s114_s25, 256, %s116_s28, [#allocation5], %s221_s20, %s221_s20, %s222_s21  }
  0xa1   :  { %218 = dma.done.wait [#allocation5], 256  }
  0xa2   :  { %219 = vsyncadd [#allocation5], 4294967040 }
  0xa3   :  { %126 = vsyncpa [#allocation4], 1 }
  0xa4   :  { %127 = vsyncpa [#allocation7], 1 }
  0xa5   :  { %128 = vsyncpa [#allocation5], 1 }

</bundles_post_ra>
